<compile_context>
chip_gen: v5e
topology: v5e:2x2
jax: 0.10.0
libtpu: 0.0.40
codegen_flags: <defaults>
</compile_context>

<pallas_src>
import functools

import jax
import jax.numpy as jnp
from jax.experimental import pallas as pl
from jax.experimental.pallas import tpu as pltpu


# ---------------------------------------------------------------------------
# Activation functions (mirrors Conv1d_inc_kernel.actf)
# ---------------------------------------------------------------------------
_ACTF = {
    "tanh": jnp.tanh,
    "elu": jax.nn.elu,
    "relu": jax.nn.relu,
    "selu": jax.nn.selu,
    "sigmoid": jax.nn.sigmoid,
    "identity": lambda x: x,
    "leakyrelu": lambda x: jax.nn.leaky_relu(x, negative_slope=0.01),
    # torch.nn.functional.gelu defaults to exact (erf) GELU, not the tanh approx.
    "gelu": lambda x: jax.nn.gelu(x, approximate=False),
}


def _get_actf(name):
    return _ACTF.get(name, lambda x: x)


# ---------------------------------------------------------------------------
# Fused Pallas kernel: the whole Conv1d stack for a block of Bt batch elements.
# refs = (x_ref, w0, b0, w1, b1, ..., w_{n-1}, b_{n-1}, o_ref)
#   x_ref : (Bt, C_in, L)        input block (channels-first)
#   w_i   : (C_out_i, K_i*C_in_i) repacked weight (row order k*C_in + c)
#   b_i   : (C_out_i, 1)          bias (f32)
#   o_ref : (Bt, C_out, L_out_pad) lane-dense output block
# ---------------------------------------------------------------------------
def _fused_conv_stack_kernel(*refs, Bt, layer_meta, L_out_pad, actf,
                             compute_dtype):
    x_ref = refs[0]
    o_ref = refs[-1]
    wb_refs = refs[1:-1]
    actf_fn = _get_actf(actf)
    L_final = layer_meta[-1][2]

    for b in range(Bt):                          # small static Python loop
        cur = x_ref[b]                           # (C_in, L)
        for li, (K, pad, L_out) in enumerate(layer_meta):
            w2 = wb_refs[2 * li][...]            # (C_out, K*C_in)
            bias = wb_refs[2 * li + 1][...]      # (C_out, 1) f32
            xc = cur.astype(compute_dtype)
            if pad > 0:                          # zero halo built in VMEM
                z = jnp.zeros((xc.shape[0], pad), xc.dtype)
                xp = jnp.concatenate([z, xc, z], axis=1)
            else:
                xp = xc
            if K == 1:
                stack = xp[:, :L_out]
            else:
                # im2col stack built ONCE: row k*C_in + c == xp[c, k:k+L_out]
                stack = jnp.concatenate(
                    [xp[:, k:k + L_out] for k in range(K)], axis=0)
            # Single MXU matmul per layer, contraction dim = K*C_in.
            y = jnp.dot(w2, stack, preferred_element_type=jnp.float32)
            cur = actf_fn(y + bias)              # (C_out, L_out) f32

        if L_out_pad > L_final:                  # lane-dense store (mult of 128)
            cur = jnp.concatenate(
                [cur,
                 jnp.zeros((cur.shape[0], L_out_pad - L_final), cur.dtype)],
                axis=1)
        o_ref[b] = cur.astype(o_ref.dtype)


# ---------------------------------------------------------------------------
# Wrapper: one pallas_call for the whole conv stack (NCL layout).
# ---------------------------------------------------------------------------
def conv1d_stack(x_ncl, params, actf, *, compute_dtype=None, batch_block=None):
    """Fused Conv1d stack + bias + activation.

    x_ncl:  (B, C_in, L)
    params: list of (w: (C_out, C_in_i, K_i), b: (C_out,), padding_i)
    returns (B, C_out, L_final)
    """
    # TODO(synk): tile the length axis (with per-layer K-1 halos) for very long
    # L; currently each grid step keeps the full (C, L) slab in VMEM.
    B, C_in, L = x_ncl.shape
    assert params and params[0][0].shape[1] == C_in
    if compute_dtype is None:
        compute_dtype = x_ncl.dtype
    out_dtype = x_ncl.dtype

    # Static per-layer geometry + repacked weights.
    layer_meta, w2_list, b2_list = [], [], []
    cur_L = L
    for (w, b, pad) in params:
        C_out_i, c_in_i, K = w.shape
        L_out = cur_L + 2 * pad - K + 1
        assert K >= 1 and L_out > 0, "invalid conv geometry"
        layer_meta.append((K, pad, L_out))
        # w2[o, k*C_in + c] = w[o, c, k]  (matches im2col row order).
        w2_list.append(jnp.transpose(w, (0, 2, 1))
                       .reshape(C_out_i, K * c_in_i).astype(compute_dtype))
        b2_list.append(b.reshape(C_out_i, 1).astype(jnp.float32))
        cur_L = L_out
    L_final = cur_L
    C_out = params[-1][0].shape[0]
    L_out_pad = pl.cdiv(L_final, 128) * 128

    # Batch blocking: amortize per-step overhead, but keep >=2 grid steps
    # whenever B >= 2 so both v7x TensorCores get work.
    if batch_block is None:
        batch_block = max(1, min(8, B // 2)) if B > 1 else 1
    Bt = batch_block
    Bp = pl.cdiv(B, Bt) * Bt
    if Bp != B:
        x_ncl = jnp.pad(x_ncl, ((0, Bp - B), (0, 0), (0, 0)))
    grid = (Bp // Bt,)

    x_in = x_ncl.astype(compute_dtype)

    in_specs = [pl.BlockSpec((Bt, C_in, L), lambda i: (i, 0, 0))]
    inputs = [x_in]
    for w2, b2 in zip(w2_list, b2_list):
        in_specs.append(pl.BlockSpec(w2.shape, lambda i: (0, 0)))
        in_specs.append(pl.BlockSpec(b2.shape, lambda i: (0, 0)))
        inputs.append(w2)
        inputs.append(b2)

    # Explicit VMEM budget: double-buffered blocks + generous headroom for
    # in-kernel temporaries; clamped to [32 MiB, 48 MiB] (safe on v7x's 64 MiB,
    # raises the 16/32 MiB scoped defaults on v5e/v6e).
    in_isz = jnp.dtype(compute_dtype).itemsize
    out_isz = jnp.dtype(out_dtype).itemsize
    est = 2 * Bt * C_in * L * in_isz
    est += 2 * Bt * C_out * L_out_pad * out_isz
    for w2, b2 in zip(w2_list, b2_list):
        est += 2 * (w2.size * in_isz + b2.size * 4)
    max_rows = max(w.shape[2] * w.shape[1] + 2 * w.shape[0]
                   for (w, _, _) in params)
    max_L = max([L] + [m[2] for m in layer_meta])
    est += 4 * max_rows * (max_L + 256) * 4
    vmem_limit = int(min(48 * 2 ** 20, max(32 * 2 ** 20, 2 * est)))

    kernel = functools.partial(
        _fused_conv_stack_kernel, Bt=Bt, layer_meta=tuple(layer_meta),
        L_out_pad=L_out_pad, actf=actf, compute_dtype=compute_dtype)

    out = pl.pallas_call(
        kernel,
        out_shape=jax.ShapeDtypeStruct((Bp, C_out, L_out_pad), out_dtype),
        grid=grid,
        in_specs=in_specs,
        out_specs=pl.BlockSpec((Bt, C_out, L_out_pad), lambda i: (i, 0, 0)),
        compiler_params=pltpu.CompilerParams(
            dimension_semantics=("parallel",),
            vmem_limit_bytes=vmem_limit),
    )(*inputs)

    return out[:B, :, :L_final]


# ---------------------------------------------------------------------------
# Module equivalent: parameter construction + forward
# ---------------------------------------------------------------------------
def init_conv1d_inc_kernel_params(key, layers, in_channels, out_channels,
                                  kernel_size, dtype=jnp.float32):
    """Deterministically initialize (weight, bias, padding) per layer,
    matching the PyTorch module's layer geometry."""
    params = []
    for i in range(layers):
        if i == 0:
            c_in, k, pad = in_channels, kernel_size // 2, kernel_size // 3
        elif i < layers // 2:
            c_in, k, pad = out_channels, (kernel_size - 1) // 2, kernel_size // 4
        else:
            c_in, k, pad = out_channels, kernel_size, (kernel_size - 1) // 2
        key, kw, kb = jax.random.split(key, 3)
        fan_in = c_in * k
        bound = 1.0 / jnp.sqrt(jnp.asarray(fan_in, dtype))
        w = jax.random.uniform(kw, (out_channels, c_in, k), dtype,
                               minval=-bound, maxval=bound)
        b = jax.random.uniform(kb, (out_channels,), dtype,
                               minval=-bound, maxval=bound)
        params.append((w, b, pad))
    return params


def conv1d_inc_kernel_forward(params, x, actf, *, compute_dtype=None):
    """Forward pass.  x: (B, L, C_in)  ->  (B, L_out, C_out)."""
    x_t = jnp.transpose(x, (0, 2, 1))                      # (B, C_in, L)
    y = conv1d_stack(x_t, params, actf, compute_dtype=compute_dtype)
    return jnp.transpose(y, (0, 2, 1))                     # (B, L_out, C_out)


# ---------------------------------------------------------------------------
# Demo / smoke test
# ---------------------------------------------------------------------------
if __name__ == "__main__":
    actf = "relu"
    layers = 4
    in_channels = 4
    out_channels = 8
    kernel_size = 5
    B, L = 2, 16

    key = jax.random.PRNGKey(0)
    key_p, key_x = jax.random.split(key)

    params = init_conv1d_inc_kernel_params(
        key_p, layers, in_channels, out_channels, kernel_size)
    x = jax.random.normal(key_x, (B, L, in_channels), jnp.float32)

    out = conv1d_inc_kernel_forward(params, x, actf)
    jax.block_until_ready(out)

    # Cross-check against a pure-JAX reference (lax conv) for correctness.
    def ref_forward(params, x):
        x_t = jnp.transpose(x, (0, 2, 1))
        for (w, b, pad) in params:
            y = jax.lax.conv_general_dilated(
                x_t, w, window_strides=(1,), padding=[(pad, pad)],
                dimension_numbers=("NCH", "OIH", "NCH"))
            x_t = _get_actf(actf)(y + b[None, :, None])
        return jnp.transpose(x_t, (0, 2, 1))

    ref = ref_forward(params, x)
    assert out.shape == ref.shape, (out.shape, ref.shape)
    assert jnp.allclose(out, ref, atol=1e-5, rtol=1e-5), "mismatch vs reference"

    print("KERNEL_OK")
</pallas_src>

<mosaic_0001>
module attributes {stable_mosaic.version = 11 : i64} {
  func.func @_fused_conv_stack_kernel(%arg0: i32, %arg1: memref<1x4x16xf32, #tpu.memory_space<vmem>>, %arg2: memref<8x8xf32, #tpu.memory_space<vmem>>, %arg3: memref<8x1xf32, #tpu.memory_space<vmem>>, %arg4: memref<8x16xf32, #tpu.memory_space<vmem>>, %arg5: memref<8x1xf32, #tpu.memory_space<vmem>>, %arg6: memref<8x40xf32, #tpu.memory_space<vmem>>, %arg7: memref<8x1xf32, #tpu.memory_space<vmem>>, %arg8: memref<8x40xf32, #tpu.memory_space<vmem>>, %arg9: memref<8x1xf32, #tpu.memory_space<vmem>>, %arg10: memref<1x8x128xf32, #tpu.memory_space<vmem>>) attributes {dimension_semantics = [#tpu.dimension_semantics<parallel>], iteration_bounds = array<i64: 2>, scalar_prefetch = 0 : i64, scratch_operands = 0 : i64, tpu.core_type = #tpu.core_type<tc>, window_params = [{transform_indices = @transform_0, window_bounds = array<i64: 1, 4, 16>}, {pipeline_mode = #tpu.pipeline_mode<synchronous>, transform_indices = @transform_1, window_bounds = array<i64: 8, 8>}, {pipeline_mode = #tpu.pipeline_mode<synchronous>, transform_indices = @transform_2, window_bounds = array<i64: 8, 1>}, {pipeline_mode = #tpu.pipeline_mode<synchronous>, transform_indices = @transform_3, window_bounds = array<i64: 8, 16>}, {pipeline_mode = #tpu.pipeline_mode<synchronous>, transform_indices = @transform_4, window_bounds = array<i64: 8, 1>}, {pipeline_mode = #tpu.pipeline_mode<synchronous>, transform_indices = @transform_5, window_bounds = array<i64: 8, 40>}, {pipeline_mode = #tpu.pipeline_mode<synchronous>, transform_indices = @transform_6, window_bounds = array<i64: 8, 1>}, {pipeline_mode = #tpu.pipeline_mode<synchronous>, transform_indices = @transform_7, window_bounds = array<i64: 8, 40>}, {pipeline_mode = #tpu.pipeline_mode<synchronous>, transform_indices = @transform_8, window_bounds = array<i64: 8, 1>}, {transform_indices = @transform_9, window_bounds = array<i64: 1, 8, 128>}]} {
    %c0 = arith.constant 0 : index
    %c0_0 = arith.constant 0 : index
    %c0_1 = arith.constant 0 : index
    %0 = vector.load %arg1[%c0, %c0_0, %c0_1] : memref<1x4x16xf32, #tpu.memory_space<vmem>>, vector<1x4x16xf32>
    %1 = vector.shape_cast %0 : vector<1x4x16xf32> to vector<4x16xf32>
    %c0_2 = arith.constant 0 : index
    %c0_3 = arith.constant 0 : index
    %2 = vector.load %arg2[%c0_2, %c0_3] : memref<8x8xf32, #tpu.memory_space<vmem>>, vector<8x8xf32>
    %c0_4 = arith.constant 0 : index
    %c0_5 = arith.constant 0 : index
    %3 = vector.load %arg3[%c0_4, %c0_5] : memref<8x1xf32, #tpu.memory_space<vmem>>, vector<8x1xf32>
    %cst = arith.constant 0.000000e+00 : f32
    %4 = vector.broadcast %cst : f32 to vector<4x1xf32>
    %5 = tpu.concatenate %4, %1, %4 in 1 : vector<4x1xf32>, vector<4x16xf32>, vector<4x1xf32> -> vector<4x18xf32>
    %6 = vector.extract_strided_slice %5 {offsets = [0, 0], sizes = [4, 17], strides = [1, 1]} : vector<4x18xf32> to vector<4x17xf32>
    %7 = vector.extract_strided_slice %5 {offsets = [0, 1], sizes = [4, 17], strides = [1, 1]} : vector<4x18xf32> to vector<4x17xf32>
    %8 = tpu.concatenate %6, %7 in 0 : vector<4x17xf32>, vector<4x17xf32> -> vector<8x17xf32>
    %cst_6 = arith.constant dense<0.000000e+00> : vector<8x17xf32>
    %9 = tpu.matmul %2, %8, %cst_6 {dimension_numbers = #tpu.dot_dimension_numbers<[1], [0], [0], [1], [0, 0, 1, 1], [], []>} : vector<8x8xf32>, vector<8x17xf32>, vector<8x17xf32> -> vector<8x17xf32>
    %10 = vector.broadcast %3 : vector<8x1xf32> to vector<8x17xf32>
    %11 = arith.addf %9, %10 : vector<8x17xf32>
    %cst_7 = arith.constant 0.000000e+00 : f32
    %12 = vector.broadcast %cst_7 : f32 to vector<8x17xf32>
    %13 = arith.maximumf %11, %12 : vector<8x17xf32>
    %c0_8 = arith.constant 0 : index
    %c0_9 = arith.constant 0 : index
    %14 = vector.load %arg4[%c0_8, %c0_9] : memref<8x16xf32, #tpu.memory_space<vmem>>, vector<8x16xf32>
    %c0_10 = arith.constant 0 : index
    %c0_11 = arith.constant 0 : index
    %15 = vector.load %arg5[%c0_10, %c0_11] : memref<8x1xf32, #tpu.memory_space<vmem>>, vector<8x1xf32>
    %cst_12 = arith.constant 0.000000e+00 : f32
    %16 = vector.broadcast %cst_12 : f32 to vector<8x1xf32>
    %17 = tpu.concatenate %16, %13, %16 in 1 : vector<8x1xf32>, vector<8x17xf32>, vector<8x1xf32> -> vector<8x19xf32>
    %18 = vector.extract_strided_slice %17 {offsets = [0, 0], sizes = [8, 18], strides = [1, 1]} : vector<8x19xf32> to vector<8x18xf32>
    %19 = vector.extract_strided_slice %17 {offsets = [0, 1], sizes = [8, 18], strides = [1, 1]} : vector<8x19xf32> to vector<8x18xf32>
    %20 = tpu.concatenate %18, %19 in 0 : vector<8x18xf32>, vector<8x18xf32> -> vector<16x18xf32>
    %cst_13 = arith.constant dense<0.000000e+00> : vector<8x18xf32>
    %21 = tpu.matmul %14, %20, %cst_13 {dimension_numbers = #tpu.dot_dimension_numbers<[1], [0], [0], [1], [0, 0, 1, 1], [], []>} : vector<8x16xf32>, vector<16x18xf32>, vector<8x18xf32> -> vector<8x18xf32>
    %22 = vector.broadcast %15 : vector<8x1xf32> to vector<8x18xf32>
    %23 = arith.addf %21, %22 : vector<8x18xf32>
    %cst_14 = arith.constant 0.000000e+00 : f32
    %24 = vector.broadcast %cst_14 : f32 to vector<8x18xf32>
    %25 = arith.maximumf %23, %24 : vector<8x18xf32>
    %c0_15 = arith.constant 0 : index
    %c0_16 = arith.constant 0 : index
    %26 = vector.load %arg6[%c0_15, %c0_16] : memref<8x40xf32, #tpu.memory_space<vmem>>, vector<8x40xf32>
    %c0_17 = arith.constant 0 : index
    %c0_18 = arith.constant 0 : index
    %27 = vector.load %arg7[%c0_17, %c0_18] : memref<8x1xf32, #tpu.memory_space<vmem>>, vector<8x1xf32>
    %cst_19 = arith.constant 0.000000e+00 : f32
    %28 = vector.broadcast %cst_19 : f32 to vector<8x2xf32>
    %29 = tpu.concatenate %28, %25, %28 in 1 : vector<8x2xf32>, vector<8x18xf32>, vector<8x2xf32> -> vector<8x22xf32>
    %30 = vector.extract_strided_slice %29 {offsets = [0, 0], sizes = [8, 18], strides = [1, 1]} : vector<8x22xf32> to vector<8x18xf32>
    %31 = vector.extract_strided_slice %29 {offsets = [0, 1], sizes = [8, 18], strides = [1, 1]} : vector<8x22xf32> to vector<8x18xf32>
    %32 = vector.extract_strided_slice %29 {offsets = [0, 2], sizes = [8, 18], strides = [1, 1]} : vector<8x22xf32> to vector<8x18xf32>
    %33 = vector.extract_strided_slice %29 {offsets = [0, 3], sizes = [8, 18], strides = [1, 1]} : vector<8x22xf32> to vector<8x18xf32>
    %34 = vector.extract_strided_slice %29 {offsets = [0, 4], sizes = [8, 18], strides = [1, 1]} : vector<8x22xf32> to vector<8x18xf32>
    %35 = tpu.concatenate %30, %31, %32, %33, %34 in 0 : vector<8x18xf32>, vector<8x18xf32>, vector<8x18xf32>, vector<8x18xf32>, vector<8x18xf32> -> vector<40x18xf32>
    %cst_20 = arith.constant dense<0.000000e+00> : vector<8x18xf32>
    %36 = tpu.matmul %26, %35, %cst_20 {dimension_numbers = #tpu.dot_dimension_numbers<[1], [0], [0], [1], [0, 0, 1, 1], [], []>} : vector<8x40xf32>, vector<40x18xf32>, vector<8x18xf32> -> vector<8x18xf32>
    %37 = vector.broadcast %27 : vector<8x1xf32> to vector<8x18xf32>
    %38 = arith.addf %36, %37 : vector<8x18xf32>
    %cst_21 = arith.constant 0.000000e+00 : f32
    %39 = vector.broadcast %cst_21 : f32 to vector<8x18xf32>
    %40 = arith.maximumf %38, %39 : vector<8x18xf32>
    %c0_22 = arith.constant 0 : index
    %c0_23 = arith.constant 0 : index
    %41 = vector.load %arg8[%c0_22, %c0_23] : memref<8x40xf32, #tpu.memory_space<vmem>>, vector<8x40xf32>
    %c0_24 = arith.constant 0 : index
    %c0_25 = arith.constant 0 : index
    %42 = vector.load %arg9[%c0_24, %c0_25] : memref<8x1xf32, #tpu.memory_space<vmem>>, vector<8x1xf32>
    %cst_26 = arith.constant 0.000000e+00 : f32
    %43 = vector.broadcast %cst_26 : f32 to vector<8x2xf32>
    %44 = tpu.concatenate %43, %40, %43 in 1 : vector<8x2xf32>, vector<8x18xf32>, vector<8x2xf32> -> vector<8x22xf32>
    %45 = vector.extract_strided_slice %44 {offsets = [0, 0], sizes = [8, 18], strides = [1, 1]} : vector<8x22xf32> to vector<8x18xf32>
    %46 = vector.extract_strided_slice %44 {offsets = [0, 1], sizes = [8, 18], strides = [1, 1]} : vector<8x22xf32> to vector<8x18xf32>
    %47 = vector.extract_strided_slice %44 {offsets = [0, 2], sizes = [8, 18], strides = [1, 1]} : vector<8x22xf32> to vector<8x18xf32>
    %48 = vector.extract_strided_slice %44 {offsets = [0, 3], sizes = [8, 18], strides = [1, 1]} : vector<8x22xf32> to vector<8x18xf32>
    %49 = vector.extract_strided_slice %44 {offsets = [0, 4], sizes = [8, 18], strides = [1, 1]} : vector<8x22xf32> to vector<8x18xf32>
    %50 = tpu.concatenate %45, %46, %47, %48, %49 in 0 : vector<8x18xf32>, vector<8x18xf32>, vector<8x18xf32>, vector<8x18xf32>, vector<8x18xf32> -> vector<40x18xf32>
    %cst_27 = arith.constant dense<0.000000e+00> : vector<8x18xf32>
    %51 = tpu.matmul %41, %50, %cst_27 {dimension_numbers = #tpu.dot_dimension_numbers<[1], [0], [0], [1], [0, 0, 1, 1], [], []>} : vector<8x40xf32>, vector<40x18xf32>, vector<8x18xf32> -> vector<8x18xf32>
    %52 = vector.broadcast %42 : vector<8x1xf32> to vector<8x18xf32>
    %53 = arith.addf %51, %52 : vector<8x18xf32>
    %cst_28 = arith.constant 0.000000e+00 : f32
    %54 = vector.broadcast %cst_28 : f32 to vector<8x18xf32>
    %55 = arith.maximumf %53, %54 : vector<8x18xf32>
    %cst_29 = arith.constant 0.000000e+00 : f32
    %56 = vector.broadcast %cst_29 : f32 to vector<8x110xf32>
    %57 = tpu.concatenate %55, %56 in 1 : vector<8x18xf32>, vector<8x110xf32> -> vector<8x128xf32>
    %c0_30 = arith.constant 0 : index
    %c0_31 = arith.constant 0 : index
    %c0_32 = arith.constant 0 : index
    %58 = vector.load %arg10[%c0_30, %c0_31, %c0_32] : memref<1x8x128xf32, #tpu.memory_space<vmem>>, vector<1x8x128xf32>
    %59 = vector.shape_cast %58 : vector<1x8x128xf32> to vector<8x128xf32>
    %60 = vector.shape_cast %57 : vector<8x128xf32> to vector<1x8x128xf32>
    tpu.vector_store %arg10[%c0_30, %c0_31, %c0_32], %60 {strides = array<i32>} : memref<1x8x128xf32, #tpu.memory_space<vmem>>, vector<1x8x128xf32>,
    return
  }
  func.func @transform_0(%arg0: i32) -> (i32, i32, i32) {
    %c0_i32 = arith.constant 0 : i32
    %c0_i32_0 = arith.constant 0 : i32
    %c0_i32_1 = arith.constant 0 : i32
    return %arg0, %c0_i32, %c0_i32_0 : i32, i32, i32
  }
  func.func @transform_1(%arg0: i32) -> (i32, i32) {
    %c0_i32 = arith.constant 0 : i32
    %c0_i32_0 = arith.constant 0 : i32
    %c0_i32_1 = arith.constant 0 : i32
    return %c0_i32, %c0_i32_0 : i32, i32
  }
  func.func @transform_2(%arg0: i32) -> (i32, i32) {
    %c0_i32 = arith.constant 0 : i32
    %c0_i32_0 = arith.constant 0 : i32
    %c0_i32_1 = arith.constant 0 : i32
    return %c0_i32, %c0_i32_0 : i32, i32
  }
  func.func @transform_3(%arg0: i32) -> (i32, i32) {
    %c0_i32 = arith.constant 0 : i32
    %c0_i32_0 = arith.constant 0 : i32
    %c0_i32_1 = arith.constant 0 : i32
    return %c0_i32, %c0_i32_0 : i32, i32
  }
  func.func @transform_4(%arg0: i32) -> (i32, i32) {
    %c0_i32 = arith.constant 0 : i32
    %c0_i32_0 = arith.constant 0 : i32
    %c0_i32_1 = arith.constant 0 : i32
    return %c0_i32, %c0_i32_0 : i32, i32
  }
  func.func @transform_5(%arg0: i32) -> (i32, i32) {
    %c0_i32 = arith.constant 0 : i32
    %c0_i32_0 = arith.constant 0 : i32
    %c0_i32_1 = arith.constant 0 : i32
    return %c0_i32, %c0_i32_0 : i32, i32
  }
  func.func @transform_6(%arg0: i32) -> (i32, i32) {
    %c0_i32 = arith.constant 0 : i32
    %c0_i32_0 = arith.constant 0 : i32
    %c0_i32_1 = arith.constant 0 : i32
    return %c0_i32, %c0_i32_0 : i32, i32
  }
  func.func @transform_7(%arg0: i32) -> (i32, i32) {
    %c0_i32 = arith.constant 0 : i32
    %c0_i32_0 = arith.constant 0 : i32
    %c0_i32_1 = arith.constant 0 : i32
    return %c0_i32, %c0_i32_0 : i32, i32
  }
  func.func @transform_8(%arg0: i32) -> (i32, i32) {
    %c0_i32 = arith.constant 0 : i32
    %c0_i32_0 = arith.constant 0 : i32
    %c0_i32_1 = arith.constant 0 : i32
    return %c0_i32, %c0_i32_0 : i32, i32
  }
  func.func @transform_9(%arg0: i32) -> (i32, i32, i32) {
    %c0_i32 = arith.constant 0 : i32
    %c0_i32_0 = arith.constant 0 : i32
    %c0_i32_1 = arith.constant 0 : i32
    return %arg0, %c0_i32, %c0_i32_0 : i32, i32, i32
  }
}

</mosaic_0001>

<bundles_post_ra>
// kernel: tpu_custom_call.1
= control target key start
LH: loop header
LB: loop body
LE: loop exit
PB: predicated region body
PF: predicated region fallthrough
CT: control target
= control target key end

     0   :  { %14 = vsyncpa [#allocation3], 0  ;;  %s990_s0 = inlined_call_operand.vmem [shape: f32[2,4,16], index: 0, kind: input, shape index: {}]   ;;  %s991_s1 = inlined_call_operand.vmem [shape: f32[8,8], index: 1, kind: input, shape index: {}]   ;;  %s992_s2 = inlined_call_operand.vmem [shape: f32[8,1], index: 2, kind: input, shape index: {}]   ;;  %s993_s3 = inlined_call_operand.vmem [shape: f32[8,16], index: 3, kind: input, shape index: {}]   ;;  %s994_s4 = inlined_call_operand.vmem [shape: f32[8,1], index: 4, kind: input, shape index: {}]   ;;  %s995_s5 = inlined_call_operand.vmem [shape: f32[8,40], index: 5, kind: input, shape index: {}]   ;;  %s996_s6 = inlined_call_operand.vmem [shape: f32[8,1], index: 6, kind: input, shape index: {}]   ;;  %s997_s7 = inlined_call_operand.hbm [shape: f32[8,40], index: 7, kind: input, shape index: {}]   ;;  %s998_s8 = inlined_call_operand.vmem [shape: f32[8,1], index: 8, kind: input, shape index: {}]   ;;  %s999_s9 = inlined_call_operand.hbm [shape: f32[2,8,128], index: 9, kind: output, shape index: {}]  }
   0x1   :  { %15 = vsyncpa [#allocation4], 0 }
   0x2   :  { %17 = vsyncpa [#allocation4 + $0x1], 0  ;;  %s861_s30 = smov 0   ;;  %s863_s10 = smov 0  }
   0x3   :  { %s865_s11 = smov 0   ;;  %s867_s12 = smov 0  }
   0x4 LB: > { %s882_s13 = sadd.s32 4294967295, %s801_s12   ;;  %s626_s14 = sadd.s32 4294967294, %s801_s12   ;;  %s801_s12 = sphi %s867_s12, %s1005_s12   ;;  %s797_s11 = sphi %s865_s11, %s1004_s11   ;;  %s793_s10 = sphi %s863_s10, %s1003_s10   ;;  %s789_s30 = sphi %s861_s30, %s1002_s30  }
   0x5   : > { %s886_s15 = sadd.s32 1, %s801_s12   ;;  %s224_s16 = sadd.s32 1, %s797_s11 }
   0x6   : > { %s221_s17 = ssub.s32 %s801_s12, %s886_s15  ;;  %p234_p0 = scmp.ne.s32.totalorder %s797_s11, %s793_s10 }
   0x7   : > { %p222_p1 = scmp.eq.s32.totalorder %s221_s17, 0  ;;  %p235_p2 = scmp.eq.s32.totalorder %s882_s13, 1 }
   0x8   : > { %p240_p3 = scmp.ne.s32.totalorder %s793_s10, %s789_s30  ;;  %p241_p4 = scmp.eq.s32.totalorder %s626_s14, 1 }
   0x9   : > { %s897_s18 = scalar_select %p222_p1, %s797_s11, %s224_s16  }
   0xa   : > { %p899_p5 = por %p235_p2, %p234_p0  ;;  %p903_p6 = por %p241_p4, %p240_p3 }
   0xb   : > { %p627_p7 = scmp.ge.s32.totalorder %s801_s12, 1  ;;  %p248_p8 = scmp.lt.s32.totalorder %s801_s12, 3 }
   0xc   : > { %p659_p9 = scmp.eq.s32.totalorder %s882_s13, 0  ;;  %s278_s23 = sshll.u32 %s997_s7, 4  ;;  %s279_s23 = int_to_ptr.hbm [resolvable:$true] %s278_s23 }
   0xd   : > { %p249_p10 = pnand %p627_p7, %p248_p8  ;;  %s803_s24 = smov [#allocation2]  }
   0xe   : > { %s280_s25 = sshll.u32 %s803_s24, 4  ;;  %s281_s25 = int_to_ptr.vmem [resolvable:$true] %s280_s25 }
   0xf   : > { %p651_p11 = pneg %p249_p10  ;;  %303 = sbr.rel (%p249_p10) target bundleno = 1499 (0x5db), region = 56 }
  0x11   : > { %p652_p12 = pnand %p659_p9, %p651_p11 }
  0x13   : > { %654 = dma.hbm_to_vmem [thread:$0]  (!%p652_p12), %s279_s23, 128, %s281_s25, [#allocation3]  }
  0x14   : > { %780 = dma.done.wait (%p659_p9), [#allocation3], 128  }
  0x15   : > { %782 = vsyncadd (%p659_p9), [#allocation3], 4294967168  ;;  %p339_p13 = scmp.lt.s32.totalorder %s882_s13, 1  ;;  %s804_s16 = smov 1   ;;  %vm350_vm0 = vcmask 7168   ;;  %vm352_vm1 = vcmask 138240  }
  0x16   : > { %s805_s17 = smov 127   ;;  %v345_v5 = vld [vmem:[%s992_s2] sm:$0xff]  ;;  %v806_v6 = vmov 0   ;;  %vm359_vm2 = vcmask 1043456   ;;  %vm366_vm3 = vcmask 64512   ;;  %vm398_vm4 = vcmask 146432  }
  0x17   : > { %s340_s26 = scalar_select %p339_p13, %s882_s13, 1  ;;  %702 = vset.pattern.permute.xlu1 %v806_v6  ;;  %703 = vset.pattern.permute.xlu2 %v806_v6  ;;  %v344_v8 = vld [vmem:[%s991_s1] sm:$0xff]  ;;  %vm409_vm5 = vcmask 130048   ;;  %vm440_vm6 = vcmask 15360   ;;  %vm442_vm7 = vcmask 162816   ;;  %vm462_vm8 = vcmask 326656  }
  0x18   : > { %363 = vperm.xlu1 %702, %v345_v5   ;;  %704 = vset.pattern.permute.xlu0 %v806_v6  ;;  %v392_v17 = vld [vmem:[%s994_s4] sm:$0xff]  ;;  %s807_s29 = smov 2   ;;  %s810_s21 = smov 124  }
  0x19   : > { %s633_s27 = sshll.u32 %s340_s26, 2  ;;  %v391_v19 = vld [vmem:[%s993_s3] sm:$0xff]  ;;  %s336_s28 = sand.u32 1, %s793_s10  }
  0x1a   : > { %s342_s14 = scalar_lea.vmem %s990_s0, %s633_s27  ;;  %v435_v27 = vld [vmem:[%s996_s6] sm:$0xff]  ;;  %s540_s25 = scalar_lea.sflag [#allocation4], %s336_s28 }
  0x1b   : > { %v343_v0 = vld [vmem:[%s342_s14] sm:$0xf]  ;;  %s808_s14 = smov 126  }
  0x1c   : > { %347 = vrot.lane.b32.xlu0 %v343_v0, %s804_s16  ;;  %v434_v32 = vld [vmem:[%s995_s5] sm:$0xff] }
  0x1d   : > { %v488_v40 = vld [vmem:[%s998_s8] sm:$0xff] }
  0x1e   : > { %v487_v45 = vld [vmem:[#allocation2] sm:$0xff] }
  0x8a   : > { %v364_v10 = vpop.permute.xlu1 %363 }
  0x8e   : > { %v348_v1 = vpop.permute.xlu0 %347 }
  0x8f   : > { %v351_v2 = vsel %vm350_vm0, 0.0, %v348_v1 }
  0x90   : > { %v353_v3 = vsel %vm352_vm1, %v351_v2, 0.0 }
  0x91   : > { %v355_v4 = vrot.slane %v353_v3, 4 }
  0x93   : > { %356 = vrot.lane.b32.xlu0 %v355_v4, %s805_s17 }
 0x105   : > { %v357_v7 = vpop.permute.xlu0 %356 }
 0x106   : > { %v360_v9 = vsel %vm359_vm2, %v353_v3, %v357_v7 }
 0x107   : > { %385 = vmatpush.msra.mxu0 %v360_v9 }
 0x108   : > { %634 = vmatmul.msk.f32.vlgmr.msra.gmra.mxu0 %vm366_vm3, %v344_v8 }
 0x185   : > { %v387_v11 = vpop.f32.mrf.mxu0 }
 0x186   : > { %v388_v12 = vadd.f32 %v387_v11, %v364_v10 }
 0x188   : > { %v390_v13 = vmax.f32 %v388_v12, 0.0 }
 0x18a   : > { %394 = vrot.lane.b32.xlu1 %v390_v13, %s804_s16  ;;  %s809_s16 = smov 125  }
 0x1fc   : > { %v395_v14 = vpop.permute.xlu1 %394 }
 0x1fd   : > { %v397_v15 = vsel %vm350_vm0, 0.0, %v395_v14 }
 0x1fe   : > { %v399_v16 = vsel %vm398_vm4, %v397_v15, 0.0 }
 0x1ff   : > { %401 = vrot.lane.b32.xlu2 %v399_v16, %s805_s17 }
 0x207   : > { %406 = vperm.xlu2 %703, %v392_v17  }
 0x259   : > { %v402_v18 = vpop.permute.xlu2 %401 }
 0x25a   : > { %427 = vmatpush.msra.mxu1 %v402_v18 }
 0x25c   : > { %635 = vmatpush.msk.msra.mxu1 %vm398_vm4, %v397_v15 }
 0x25d   : > { %636 = vmatmul.msk.f32.vlgmr.msra.gmra.mxu1 %vm409_vm5, %v391_v19 }
 0x261   : > { %v407_v20 = vpop.permute.xlu2 %406 }
 0x2da   : > { %v430_v21 = vpop.f32.mrf.mxu1 }
 0x2db   : > { %v431_v22 = vadd.f32 %v430_v21, %v407_v20 }
 0x2dd   : > { %v433_v23 = vmax.f32 %v431_v22, 0.0 }
 0x2df   : > { %437 = vrot.lane.b32.xlu0 %v433_v23, %s807_s29 }
 0x351   : > { %v438_v24 = vpop.permute.xlu0 %437 }
 0x352   : > { %v441_v25 = vsel %vm440_vm6, 0.0, %v438_v24 }
 0x353   : > { %v443_v26 = vsel %vm442_vm7, %v441_v25, 0.0 }
 0x354   : > { %448 = vrot.lane.b32.xlu0 %v443_v26, %s808_s14  ;;  %451 = vrot.lane.b32.xlu2 %v443_v26, %s809_s16 }
 0x355   : > { %454 = vrot.lane.b32.xlu1 %v443_v26, %s810_s21 }
 0x35c   : > { %459 = vperm.xlu2 %703, %v435_v27  }
 0x35d   : > { %445 = vrot.lane.b32.xlu1 %v443_v26, %s805_s17 }
 0x3ae   : > { %v452_v29 = vpop.permute.xlu2 %451 }
 0x3b6   : > { %v460_v33 = vpop.permute.xlu2 %459 }
 0x3c6   : > { %v449_v30 = vpop.permute.xlu0 %448 }
 0x3c7   : > { %v455_v28 = vpop.permute.xlu1 %454 }
 0x3c8   : > { %477 = vmatpush.msra.mxu2 %v455_v28 }
 0x3ca   : > { %478 = vmatpush.msra.mxu2 %v452_v29 }
 0x3cc   : > { %479 = vmatpush.msra.mxu2 %v449_v30 }
 0x3cf   : > { %v446_v31 = vpop.permute.xlu1 %445 }
 0x3d0   : > { %480 = vmatpush.msra.mxu2 %v446_v31 }
 0x3d2   : > { %637 = vmatpush.msk.msra.mxu2 %vm442_vm7, %v441_v25 }
 0x3d3   : > { %638 = vmatmul.msk.f32.vlgmr.msra.gmra.mxu2 %vm462_vm8, %v434_v32 }
 0x456   : > { %v483_v34 = vpop.f32.mrf.mxu2 }
 0x457   : > { %v484_v35 = vadd.f32 %v483_v34, %v460_v33 }
 0x459   : > { %v486_v36 = vmax.f32 %v484_v35, 0.0 }
 0x45b   : > { %490 = vrot.lane.b32.xlu0 %v486_v36, %s807_s29  ;;  %s632_s29 = sshll.u32 %s336_s28, 3 }
 0x45c   : > { %s338_s22 = scalar_lea.vmem [#allocation5], %s632_s29  ;;  %s755_s29 = scalar_lea.hbm %s999_s9, 16 }
 0x45d   : > { %s552_s23 = sshll.u32 %s338_s22, 4  ;;  %s553_s23 = int_to_ptr.vmem [resolvable:$true] %s552_s23 }
 0x4cd   : > { %v491_v37 = vpop.permute.xlu0 %490 }
 0x4ce   : > { %v493_v38 = vsel %vm440_vm6, 0.0, %v491_v37 }
 0x4cf   : > { %v494_v39 = vsel %vm442_vm7, %v493_v38, 0.0 }
 0x4d0   : > { %499 = vrot.lane.b32.xlu0 %v494_v39, %s808_s14  ;;  %502 = vrot.lane.b32.xlu2 %v494_v39, %s809_s16  ;;  %s642_s14 = sshll.u32 %s882_s13, 3 }
 0x4d1   : > { %505 = vrot.lane.b32.xlu1 %v494_v39, %s810_s21 }
 0x4d8   : > { %510 = vperm.xlu2 %703, %v488_v40  }
 0x4d9   : > { %496 = vrot.lane.b32.xlu1 %v494_v39, %s805_s17  ;;  %s550_s17 = scalar_lea.hbm %s999_s9, %s642_s14 }
 0x4da   : > { %s554_s24 = sshll.u32 %s550_s17, 4  ;;  %s555_s24 = int_to_ptr.hbm [resolvable:$true] %s554_s24 }
 0x4db   : > { %s749_s26 = sshra.s32 %s555_s24, 4  ;;  %s750_s26 = int_to_ptr.hbm [resolvable:$true] %s749_s26 }
 0x4dc   : > { %s751_s13 = scalar_lea.hbm %s750_s26, 8  ;;  %p756_p3 = scmp.lt.s32.totalorder %s750_s26, %s999_s9 }
 0x4dd   : > { %p752_p0 = scmp.ne.s32.totalorder %s750_s26, %s751_s13  ;;  %p757_p4 = scmp.lt.s32.totalorder %s755_s29, %s751_s13 }
 0x4df   : > { %p753_p1 = pnand %p752_p0, %p899_p5  ;;  %p758_p7 = por %p757_p4, %p756_p3 }
 0x4e1   : > { %p754_p2 = pneg %p753_p1 }
 0x4e3   : > { %p759_p8 = pnand %p758_p7, %p754_p2 }
 0x52a   : > { %v503_v42 = vpop.permute.xlu2 %502 }
 0x532   : > { %v511_v46 = vpop.permute.xlu2 %510 }
 0x542   : > { %v500_v43 = vpop.permute.xlu0 %499 }
 0x543   : > { %v506_v41 = vpop.permute.xlu1 %505 }
 0x544   : > { %527 = vmatpush.msra.mxu3 %v506_v41 }
 0x546   : > { %528 = vmatpush.msra.mxu3 %v503_v42 }
 0x548   : > { %529 = vmatpush.msra.mxu3 %v500_v43 }
 0x54b   : > { %v497_v44 = vpop.permute.xlu1 %496 }
 0x54c   : > { %530 = vmatpush.msra.mxu3 %v497_v44 }
 0x54e   : > { %639 = vmatpush.msk.msra.mxu3 %vm442_vm7, %v493_v38 }
 0x54f   : > { %640 = vmatmul.msk.f32.vlgmr.msra.gmra.mxu3 %vm462_vm8, %v487_v45 }
 0x5d2   : > { %v533_v47 = vpop.f32.mrf.mxu3 }
 0x5d3   : > { %v534_v48 = vadd.f32 %v533_v47, %v511_v46 }
 0x5d5   : > { %v536_v49 = vmax.f32 %v534_v48, 0.0 }
 0x5d7   : > { %v537_v50 = vsel %vm398_vm4, %v536_v49, 0.0 }
 0x5d8   : > { %538 = vst [vmem:[%s338_s22] sm:$0xff] %v537_v50 }
 0x5d9   : > { %762 = shalt.err (!%p759_p8)
}
 0x5da   : > { %649 = dma.vmem_to_hbm [thread:$0]  (%p899_p5), %s553_s23, 128, %s555_s24, %s540_s25  }
 0x5db PF: > { %p661_p9 = scmp.ge.s32.totalorder %s801_s12, 2  ;;  %s566_s28 = sand.u32 1, %s789_s30  }
 0x5dc   : > { %s567_s17 = scalar_lea.sflag [#allocation4], %s566_s28 }
 0x5dd   : > { %p656_p10 = pnand %p661_p9, %p903_p6 }
 0x5df   : > { %p657_p11 = pneg %p656_p10 }
 0x5e1   : > { %784 = dma.done.wait (%p657_p11), %s567_s17, 128  }
 0x5e2   : > { %786 = vsyncadd (%p657_p11), %s567_s17, 4294967168  ;;  %p20_p12 = scmp.ge.s32.totalorder %s886_s15, 4   ;;  %s1002_s30 = smov %s793_s10 }
 0x5e3   : > { %s1003_s10 = smov %s797_s11  ;;  %s1004_s11 = smov %s897_s18 }
 0x5e4   : > { %s1005_s12 = smov %s886_s15  ;;  %22 = sbr.rel (!%p20_p12) target bundleno = 4 (0x4), region = 96 }
 0x5e9   :  { %573 = vsyncpa [#allocation3], 1 }
 0x5ea   :  { %575 = vsyncpa [#allocation3 + $0x1], 1 }
 0x5eb   :  { %576 = vsyncpa [#allocation4], 1 }
 0x5ec   :  { %578 = vsyncpa [#allocation4 + $0x1], 1 }

</bundles_post_ra>
